<compile_context>
chip_gen: v7x
topology: tpu7x:2x2x1
jax: 0.10.0
libtpu: 0.0.40
codegen_flags: <defaults>
</compile_context>

<pallas_src>
import math
from functools import partial

import jax
import jax.numpy as jnp
from jax.experimental import pallas as pl
from jax.experimental.pallas import tpu as pltpu

BN_EPS = 1e-5
EXPANSION = 2


# ---------------------------------------------------------------------------
# Fused Pallas kernel: entire Bottleneck block in one invocation
# ---------------------------------------------------------------------------
def _bottleneck_kernel(*refs, channel_change, cmid):
    if channel_change:
        x_ref, adj_ref, w21_ref, b1_ref, b2_ref, w3_ref, b3_ref, o_ref = refs
    else:
        x_ref, adj_ref, w1_ref, b1_ref, w3_ref, b3_ref, o_ref = refs

    dot = partial(jnp.dot, preferred_element_type=jnp.float32)  # DEFAULT precision

    x = x_ref[...]          # (M, Cin)   with M = B*N (batch folded into rows)
    adj = adj_ref[...]      # (M, M)     block-diagonal adjacency

    if channel_change:
        # gconv1 (Cin -> Cmid) and gconv2 (Cin -> 2*Cmid) both take the (A@X)@W order and
        # share A@X; their weight matmuls are fused as one dot against [W2 | W1].
        ax = dot(adj, x)                                   # (M, Cin), computed once
        y21 = dot(ax, w21_ref[...])                        # (M, 2*Cmid + Cmid)
        # Split point 2*Cmid is lane-aligned (multiple of 128 here) => no cross-vreg shuffle.
        res = jnp.maximum(y21[:, : 2 * cmid] + b2_ref[...], 0.0)   # gconv2 branch (residual)
        h1 = jnp.maximum(y21[:, 2 * cmid:] + b1_ref[...], 0.0)     # gconv1 branch
    else:
        # Cin = 2*Cmid > Cmid  ->  A @ (X @ W1) order (adj matmul on the narrow side).
        h1 = jnp.maximum(dot(adj, dot(x, w1_ref[...])) + b1_ref[...], 0.0)
        res = x                                            # identity residual (raw input)

    # gconv3: Cmid -> 2*Cmid ; Cmid <= 2*Cmid  ->  (A @ H) @ W3 order.
    out = jnp.maximum(dot(dot(adj, h1), w3_ref[...]) + b3_ref[...], 0.0)

    o_ref[...] = jnp.maximum(out + res, 0.0)               # residual add + final ReLU


# ---------------------------------------------------------------------------
# Wrapper
# ---------------------------------------------------------------------------
def bottleneck_forward(x, adj, p):
    """x: (B, N, Cin); adj: (N, N); p: folded params from fold_params()."""
    B, N, Cin = x.shape
    cmid = p["w3"].shape[0]
    Cout = p["w3"].shape[1]
    channel_change = "w21" in p
    if not channel_change:
        assert Cin == Cout, "identity residual requires input_dim == output_dim * expansion"

    M = B * N
    x2d = x.reshape(M, Cin)                                   # fold batch into M once
    adj_bd = jnp.kron(jnp.eye(B, dtype=adj.dtype), adj)       # (M, M) block-diagonal adjacency

    if channel_change:
        inputs = [x2d, adj_bd, p["w21"], p["b1"], p["b2"], p["w3"], p["b3"]]
        wx_cols = p["w21"].shape[1]
    else:
        inputs = [x2d, adj_bd, p["w1"], p["b1"], p["w3"], p["b3"]]
        wx_cols = p["w1"].shape[1]

    # Advisory cost estimate (kernel is launch/DMA-latency bound at this size).
    flops = (2 * M * M * Cin            # A_bd @ X   (or A_bd @ (X W1) path, same order of mag)
             + 2 * M * Cin * wx_cols    # x-side weight matmul(s)
             + 2 * M * M * cmid         # A_bd @ H1
             + 2 * M * cmid * Cout      # W3 matmul
             + 6 * M * Cout)            # biases / ReLUs / residual add
    bytes_accessed = 4 * (sum(a.size for a in inputs) + M * Cout)
    cost = pl.CostEstimate(flops=flops, transcendentals=0, bytes_accessed=bytes_accessed)

    vmem = pl.BlockSpec(memory_space=pltpu.MemorySpace.VMEM)  # whole array resident in VMEM
    kernel = partial(_bottleneck_kernel, channel_change=channel_change, cmid=cmid)
    out2d = pl.pallas_call(
        kernel,
        out_shape=jax.ShapeDtypeStruct((M, Cout), jnp.float32),
        in_specs=[vmem] * len(inputs),
        out_specs=vmem,
        cost_estimate=cost,
    )(*inputs)
    return out2d.reshape(B, N, Cout)


# ---------------------------------------------------------------------------
# Parameters (raw = conv + BN as in the PyTorch module; folded = what the kernel consumes)
# ---------------------------------------------------------------------------
def make_graphconv_params(key, cin, cout):
    kw, kb, kg, kbe, km, kv = jax.random.split(key, 6)
    return dict(
        w=jax.random.normal(kw, (cin, cout), jnp.float32) * (1.0 / math.sqrt(cin)),
        b=0.01 * jax.random.normal(kb, (cout,), jnp.float32),
        gamma=1.0 + 0.1 * jax.random.normal(kg, (cout,), jnp.float32),   # BN weight
        beta=0.1 * jax.random.normal(kbe, (cout,), jnp.float32),          # BN bias
        mean=0.1 * jax.random.normal(km, (cout,), jnp.float32),           # running_mean
        var=0.5 + jax.random.uniform(kv, (cout,), jnp.float32),           # running_var > 0
    )


def make_bottleneck_params(key, input_dim, output_dim, channel_change):
    k1, k2, k3 = jax.random.split(key, 3)
    raw = dict(
        g1=make_graphconv_params(k1, input_dim, output_dim),
        g3=make_graphconv_params(k3, output_dim, output_dim * EXPANSION),
    )
    if channel_change:
        raw["g2"] = make_graphconv_params(k2, input_dim, output_dim * EXPANSION)
    else:
        assert input_dim == output_dim * EXPANSION
    return raw


def fold_params(raw):
    """Fold BatchNorm1d (eval mode) into the graph-conv weight/bias; fuse W2|W1 if present."""
    def fold(gp):
        scale = gp["gamma"] * jax.lax.rsqrt(gp["var"] + BN_EPS)
        w = gp["w"] * scale[None, :]
        b = (gp["b"] - gp["mean"]) * scale + gp["beta"]
        return w, b.reshape(1, -1)

    w1, b1 = fold(raw["g1"])
    w3, b3 = fold(raw["g3"])
    p = dict(b1=b1, w3=w3, b3=b3)
    if "g2" in raw:
        w2, b2 = fold(raw["g2"])
        # Wider W2 block first so the in-kernel split point (2*Cmid) is 128-lane aligned.
        p["w21"] = jnp.concatenate([w2, w1], axis=1)
        p["b2"] = b2
    else:
        p["w1"] = w1
    return p


# ---------------------------------------------------------------------------
# Pure-JAX reference (unfused, explicit BN, HIGHEST precision)
# ---------------------------------------------------------------------------
_REF_PREC = jax.lax.Precision.HIGHEST


def _ref_graphconv(x, adj, gp):
    h = jnp.einsum("bnc,cd->bnd", x, gp["w"], precision=_REF_PREC)
    y = jnp.einsum("mn,bnd->bmd", adj, h, precision=_REF_PREC) + gp["b"]
    y = (y - gp["mean"]) * jax.lax.rsqrt(gp["var"] + BN_EPS) * gp["gamma"] + gp["beta"]
    return jnp.maximum(y, 0.0)


def _ref_bottleneck(x, adj, raw):
    out = _ref_graphconv(x, adj, raw["g1"])
    out = _ref_graphconv(out, adj, raw["g3"])
    res = _ref_graphconv(x, adj, raw["g2"]) if "g2" in raw else x
    return jnp.maximum(out + res, 0.0)


# ---------------------------------------------------------------------------
# Main
# ---------------------------------------------------------------------------
def build_adj(n_nodes):
    """Symmetrically-normalized chain adjacency with self-loops (deterministic)."""
    a = jnp.eye(n_nodes, dtype=jnp.float32)
    idx = jnp.arange(n_nodes - 1)
    a = a.at[idx, idx + 1].set(1.0)
    a = a.at[idx + 1, idx].set(1.0)
    d_inv_sqrt = 1.0 / jnp.sqrt(jnp.sum(a, axis=1))
    return a * d_inv_sqrt[:, None] * d_inv_sqrt[None, :]


if __name__ == "__main__":
    key = jax.random.PRNGKey(0)
    k_x1, k_x2, k_p1, k_p2 = jax.random.split(key, 4)

    B, N = 2, 16                      # batch, graph nodes (skeleton joints)
    adj = build_adj(N)

    # Kernel uses DEFAULT matmul precision (bf16 MXU passes); reference is HIGHEST -> loose tol.
    TOL = 5e-2

    # 1) channel_change=True : 64 -> (64) -> 128, residual through gconv2 (64 -> 128)
    x1 = jax.random.normal(k_x1, (B, N, 64), jnp.float32)
    raw1 = make_bottleneck_params(k_p1, input_dim=64, output_dim=64, channel_change=True)
    out1 = jax.block_until_ready(bottleneck_forward(x1, adj, fold_params(raw1)))
    ref1 = _ref_bottleneck(x1, adj, raw1)
    assert out1.shape == (B, N, 128), out1.shape
    assert jnp.allclose(out1, ref1, rtol=TOL, atol=TOL), \
        f"mismatch (max abs err {float(jnp.max(jnp.abs(out1 - ref1)))})"

    # 2) channel_change=False: 128 -> (64) -> 128, identity residual
    x2 = jax.random.normal(k_x2, (B, N, 128), jnp.float32)
    raw2 = make_bottleneck_params(k_p2, input_dim=128, output_dim=64, channel_change=False)
    out2 = jax.block_until_ready(bottleneck_forward(x2, adj, fold_params(raw2)))
    ref2 = _ref_bottleneck(x2, adj, raw2)
    assert out2.shape == (B, N, 128), out2.shape
    assert jnp.allclose(out2, ref2, rtol=TOL, atol=TOL), \
        f"mismatch (max abs err {float(jnp.max(jnp.abs(out2 - ref2)))})"

    print("KERNEL_OK")
</pallas_src>

<mosaic_0001>
module attributes {stable_mosaic.version = 11 : i64} {
  func.func @_bottleneck_kernel(%arg0: memref<32x64xf32, #tpu.memory_space<vmem>>, %arg1: memref<32x32xf32, #tpu.memory_space<vmem>>, %arg2: memref<64x192xf32, #tpu.memory_space<vmem>>, %arg3: memref<1x64xf32, #tpu.memory_space<vmem>>, %arg4: memref<1x128xf32, #tpu.memory_space<vmem>>, %arg5: memref<64x128xf32, #tpu.memory_space<vmem>>, %arg6: memref<1x128xf32, #tpu.memory_space<vmem>>, %arg7: memref<32x128xf32, #tpu.memory_space<vmem>>) attributes {dimension_semantics = [], scalar_prefetch = 0 : i64, scratch_operands = 0 : i64, tpu.core_type = #tpu.core_type<tc>} {
    %c0 = arith.constant 0 : index
    %c0_0 = arith.constant 0 : index
    %0 = vector.load %arg0[%c0, %c0_0] : memref<32x64xf32, #tpu.memory_space<vmem>>, vector<32x64xf32>
    %c0_1 = arith.constant 0 : index
    %c0_2 = arith.constant 0 : index
    %1 = vector.load %arg1[%c0_1, %c0_2] : memref<32x32xf32, #tpu.memory_space<vmem>>, vector<32x32xf32>
    %cst = arith.constant dense<0.000000e+00> : vector<32x64xf32>
    %2 = tpu.matmul %1, %0, %cst {dimension_numbers = #tpu.dot_dimension_numbers<[1], [0], [0], [1], [0, 0, 1, 1], [], []>} : vector<32x32xf32>, vector<32x64xf32>, vector<32x64xf32> -> vector<32x64xf32>
    %c0_3 = arith.constant 0 : index
    %c0_4 = arith.constant 0 : index
    %3 = vector.load %arg2[%c0_3, %c0_4] : memref<64x192xf32, #tpu.memory_space<vmem>>, vector<64x192xf32>
    %cst_5 = arith.constant dense<0.000000e+00> : vector<32x192xf32>
    %4 = tpu.matmul %2, %3, %cst_5 {dimension_numbers = #tpu.dot_dimension_numbers<[1], [0], [0], [1], [0, 0, 1, 1], [], []>} : vector<32x64xf32>, vector<64x192xf32>, vector<32x192xf32> -> vector<32x192xf32>
    %5 = vector.extract_strided_slice %4 {offsets = [0, 0], sizes = [32, 128], strides = [1, 1]} : vector<32x192xf32> to vector<32x128xf32>
    %c0_6 = arith.constant 0 : index
    %c0_7 = arith.constant 0 : index
    %6 = vector.load %arg4[%c0_6, %c0_7] : memref<1x128xf32, #tpu.memory_space<vmem>>, vector<1x128xf32>
    %7 = vector.broadcast %6 : vector<1x128xf32> to vector<32x128xf32>
    %8 = arith.addf %5, %7 : vector<32x128xf32>
    %cst_8 = arith.constant 0.000000e+00 : f32
    %9 = vector.broadcast %cst_8 : f32 to vector<32x128xf32>
    %10 = arith.maximumf %8, %9 : vector<32x128xf32>
    %11 = vector.extract_strided_slice %4 {offsets = [0, 128], sizes = [32, 64], strides = [1, 1]} : vector<32x192xf32> to vector<32x64xf32>
    %c0_9 = arith.constant 0 : index
    %c0_10 = arith.constant 0 : index
    %12 = vector.load %arg3[%c0_9, %c0_10] : memref<1x64xf32, #tpu.memory_space<vmem>>, vector<1x64xf32>
    %13 = vector.broadcast %12 : vector<1x64xf32> to vector<32x64xf32>
    %14 = arith.addf %11, %13 : vector<32x64xf32>
    %cst_11 = arith.constant 0.000000e+00 : f32
    %15 = vector.broadcast %cst_11 : f32 to vector<32x64xf32>
    %16 = arith.maximumf %14, %15 : vector<32x64xf32>
    %cst_12 = arith.constant dense<0.000000e+00> : vector<32x64xf32>
    %17 = tpu.matmul %1, %16, %cst_12 {dimension_numbers = #tpu.dot_dimension_numbers<[1], [0], [0], [1], [0, 0, 1, 1], [], []>} : vector<32x32xf32>, vector<32x64xf32>, vector<32x64xf32> -> vector<32x64xf32>
    %c0_13 = arith.constant 0 : index
    %c0_14 = arith.constant 0 : index
    %18 = vector.load %arg5[%c0_13, %c0_14] : memref<64x128xf32, #tpu.memory_space<vmem>>, vector<64x128xf32>
    %cst_15 = arith.constant dense<0.000000e+00> : vector<32x128xf32>
    %19 = tpu.matmul %17, %18, %cst_15 {dimension_numbers = #tpu.dot_dimension_numbers<[1], [0], [0], [1], [0, 0, 1, 1], [], []>} : vector<32x64xf32>, vector<64x128xf32>, vector<32x128xf32> -> vector<32x128xf32>
    %c0_16 = arith.constant 0 : index
    %c0_17 = arith.constant 0 : index
    %20 = vector.load %arg6[%c0_16, %c0_17] : memref<1x128xf32, #tpu.memory_space<vmem>>, vector<1x128xf32>
    %21 = vector.broadcast %20 : vector<1x128xf32> to vector<32x128xf32>
    %22 = arith.addf %19, %21 : vector<32x128xf32>
    %cst_18 = arith.constant 0.000000e+00 : f32
    %23 = vector.broadcast %cst_18 : f32 to vector<32x128xf32>
    %24 = arith.maximumf %22, %23 : vector<32x128xf32>
    %25 = arith.addf %24, %10 : vector<32x128xf32>
    %cst_19 = arith.constant 0.000000e+00 : f32
    %26 = vector.broadcast %cst_19 : f32 to vector<32x128xf32>
    %27 = arith.maximumf %25, %26 : vector<32x128xf32>
    %c0_20 = arith.constant 0 : index
    %c0_21 = arith.constant 0 : index
    %28 = vector.load %arg7[%c0_20, %c0_21] : memref<32x128xf32, #tpu.memory_space<vmem>>, vector<32x128xf32>
    tpu.vector_store %arg7[%c0_20, %c0_21], %27 {strides = array<i32>} : memref<32x128xf32, #tpu.memory_space<vmem>>, vector<32x128xf32>,
    return
  }
}

</mosaic_0001>

<bundles_post_ra>
// kernel: tpu_custom_call.1
= control target key start
LH: loop header
LB: loop body
LE: loop exit
PB: predicated region body
PF: predicated region fallthrough
CT: control target
= control target key end

     0   :  { %12 = vsyncpa [#allocation3], 0  ;;  %s1015_s0 = inlined_call_operand.hbm [shape: f32[32,64], index: 0, kind: input, shape index: {}]   ;;  %s1016_s1 = inlined_call_operand.hbm [shape: f32[32,32], index: 1, kind: input, shape index: {}]   ;;  %s1017_s2 = inlined_call_operand.hbm [shape: f32[64,192], index: 2, kind: input, shape index: {}]   ;;  %s1018_s3 = inlined_call_operand.vmem [shape: f32[1,64], index: 3, kind: input, shape index: {}]   ;;  %s1019_s4 = inlined_call_operand.vmem [shape: f32[1,128], index: 4, kind: input, shape index: {}]   ;;  %s1020_s5 = inlined_call_operand.hbm [shape: f32[64,128], index: 5, kind: input, shape index: {}]   ;;  %s1021_s6 = inlined_call_operand.vmem [shape: f32[1,128], index: 6, kind: input, shape index: {}]   ;;  %s1022_s7 = inlined_call_operand.hbm [shape: f32[32,128], index: 7, kind: output, shape index: {}]  }
   0x1   :  { %13 = vsyncpa [#allocation6], 0 }
   0x2   :  { %14 = vsyncpa [#allocation9], 0 }
   0x3   :  { %15 = vsyncpa [#allocation4], 0  ;;  %s849_s24 = smov [#allocation5]   ;;  %s850_s26 = smov [#allocation2]  }
   0x4   :  { %s33_s25 = sshll.u32 %s849_s24, 4  ;;  %s21_s27 = sshll.u32 %s850_s26, 4  ;;  %s34_s25 = int_to_ptr.vmem [resolvable:$true] %s33_s25  ;;  %s899_s27 = int_to_ptr.vmem [resolvable:$true] %s21_s27 }
   0x5   :  { %s731_s30 = scalar_lea.hbm %s1016_s1, 512 }
   0x6   :  { %p732_p0 = scmp.ne.s32.totalorder %s1016_s1, %s731_s30  ;;  %p735_p1 = scmp.lt.u32.totalorder %s731_s30, %s1016_s1 }
   0x8   :  { %p737_p2 = pnand %p735_p1, %p732_p0 }
   0xa   :  { %740 = shalt.err (!%p737_p2)
}
   0xb   :  { %s741_s12 = scalar_lea.vmem %s34_s25, 512  ;;  %p746_p4 = scmp.lt.s32.totalorder %s34_s25, %s34_s25 }
   0xc   :  { %p742_p3 = scmp.ne.s32.totalorder %s34_s25, %s741_s12  ;;  %p747_p5 = scmp.lt.s32.totalorder %s741_s12, %s741_s12 }
   0xe   :  { %p748_p6 = por %p747_p5, %p746_p4 }
  0x10   :  { %p749_p7 = pnand %p748_p6, %p742_p3 }
  0x12   :  { %752 = shalt.err (!%p749_p7)
}
  0x13   :  { %s851_s13 = smov 128   ;;  %s852_s14 = smov 8  }
  0x14   :  { %39 = dma.hbm_to_vmem [thread:$0]  %s1016_s1, 512, %s34_s25, [#allocation6], %s851_s13, %s851_s13, %s852_s14  }
  0x15   :  { %s753_s19 = scalar_lea.hbm %s1015_s0, 512 }
  0x16   :  { %p754_p8 = scmp.ne.s32.totalorder %s1015_s0, %s753_s19  ;;  %p757_p9 = scmp.lt.u32.totalorder %s753_s19, %s1015_s0 }
  0x18   :  { %p759_p10 = pnand %p757_p9, %p754_p8 }
  0x1a   :  { %762 = shalt.err (!%p759_p10)
}
  0x1b   :  { %s763_s24 = scalar_lea.vmem %s899_s27, 512  ;;  %p768_p12 = scmp.lt.s32.totalorder %s899_s27, %s899_s27 }
  0x1c   :  { %p764_p11 = scmp.ne.s32.totalorder %s899_s27, %s763_s24  ;;  %p769_p13 = scmp.lt.s32.totalorder %s763_s24, %s763_s24 }
  0x1e   :  { %p770_p0 = por %p769_p13, %p768_p12 }
  0x20   :  { %p771_p1 = pnand %p770_p0, %p764_p11 }
  0x22   :  { %774 = shalt.err (!%p771_p1)
}
  0x23   :  { %27 = dma.hbm_to_vmem [thread:$0]  %s1015_s0, 512, %s899_s27, [#allocation3], %s851_s13, %s851_s13, %s852_s14  }
  0x24   :  { %s853_s26 = smov [#allocation7]   ;;  %s775_s8 = scalar_lea.hbm %s1017_s2, 2048 }
  0x25   :  { %s45_s28 = sshll.u32 %s853_s26, 4  ;;  %p776_p2 = scmp.ne.s32.totalorder %s1017_s2, %s775_s8  ;;  %s46_s28 = int_to_ptr.vmem [resolvable:$true] %s45_s28 }
  0x26   :  { %p779_p3 = scmp.lt.u32.totalorder %s775_s8, %s1017_s2 }
  0x28   :  { %p781_p4 = pnand %p779_p3, %p776_p2 }
  0x2a   :  { %784 = shalt.err (!%p781_p4)
}
  0x2b   :  { %s785_s15 = scalar_lea.vmem %s46_s28, 2048  ;;  %p790_p6 = scmp.lt.s32.totalorder %s46_s28, %s46_s28 }
  0x2c   :  { %p786_p5 = scmp.ne.s32.totalorder %s46_s28, %s785_s15  ;;  %p791_p7 = scmp.lt.s32.totalorder %s785_s15, %s785_s15 }
  0x2e   :  { %p792_p8 = por %p791_p7, %p790_p6 }
  0x30   :  { %p793_p9 = pnand %p792_p8, %p786_p5 }
  0x32   :  { %796 = shalt.err (!%p793_p9)
}
  0x33   :  { %s854_s0 = smov 256   ;;  %s855_s27 = smov 16  }
  0x34   :  { %51 = dma.hbm_to_vmem [thread:$0]  %s1017_s2, 2048, %s46_s28, [#allocation6], %s854_s0, %s854_s0, %s855_s27  }
  0x35   :  { %s856_s18 = smov [#allocation8]   ;;  %s797_s22 = scalar_lea.hbm %s1020_s5, 1024 }
  0x36   :  { %s61_s19 = sshll.u32 %s856_s18, 4  ;;  %p798_p10 = scmp.ne.s32.totalorder %s1020_s5, %s797_s22  ;;  %s62_s19 = int_to_ptr.vmem [resolvable:$true] %s61_s19 }
  0x37   :  { %p801_p11 = scmp.lt.u32.totalorder %s797_s22, %s1020_s5 }
  0x39   :  { %p803_p12 = pnand %p801_p11, %p798_p10 }
  0x3b   :  { %806 = shalt.err (!%p803_p12)
}
  0x3c   :  { %s807_s26 = scalar_lea.vmem %s62_s19, 1024  ;;  %p812_p0 = scmp.lt.s32.totalorder %s62_s19, %s62_s19 }
  0x3d   :  { %p808_p13 = scmp.ne.s32.totalorder %s62_s19, %s807_s26  ;;  %p813_p1 = scmp.lt.s32.totalorder %s807_s26, %s807_s26 }
  0x3f   :  { %p814_p2 = por %p813_p1, %p812_p0 }
  0x41   :  { %p815_p3 = pnand %p814_p2, %p808_p13 }
  0x43   :  { %818 = shalt.err (!%p815_p3)
}
  0x44   :  { %67 = dma.hbm_to_vmem [thread:$0]  %s1020_s5, 1024, %s62_s19, [#allocation9], %s851_s13, %s851_s13, %s852_s14  }
  0x45   :  { %841 = dma.done.wait [#allocation3], 512  }
  0x46   :  { %842 = vsyncadd [#allocation3], 4294966784 }
  0x47   :  { %843 = dma.done.wait [#allocation6], 2560  }
  0x48   :  { %844 = vsyncadd [#allocation6], 4294964736 }
  0x49   :  { %845 = dma.done.wait [#allocation9], 1024  }
  0x4a   :  { %846 = vsyncadd [#allocation9], 4294966272  ;;  %vm90_vm0 = vcmask 261120   ;;  %v82_v0 = vld [vmem:[#allocation2] sm:$0xff]  ;;  %v83_v1 = vld [vmem:[#allocation2 + $0x8] sm:$0xff]  ;;  %v857_v34 = vmov 0.0  }
  0x4b   :  { %v84_v2 = vld [vmem:[#allocation2 + $0x10] sm:$0xff]  ;;  %v665_v3 = vpack.c.bf16 %v83_v1, %v82_v0  ;;  %v85_v4 = vld [vmem:[#allocation2 + $0x18] sm:$0xff]  ;;  %v86_v5 = vld [vmem:[#allocation5] sm:$0xff]  ;;  %281 = vmatprep.mubr.f32.mxu1 %v857_v34  ;;  %vm204_vm1 = vcmask 523264  }
  0x4c   :  { %v669_v6 = vpack.c.bf16 %v85_v4, %v84_v2  ;;  %623 = vmatprep.mubr.msk.f32.mxu0 %vm90_vm0, %v86_v5  ;;  %v189_v7 = vld [vmem:[#allocation7 + $0x8] sm:$0xff]  ;;  %v191_v8 = vld [vmem:[#allocation7 + $0x18] sm:$0xff]  ;;  %v188_v9 = vld [vmem:[#allocation7] sm:$0xff] }
  0x4d   :  { %666 = vmatprep.subr.bf16.mxu0 %v665_v3  ;;  %v190_v10 = vld [vmem:[#allocation7 + $0x10] sm:$0xff]  ;;  %v673_v11 = vpack.c.bf16 %v191_v8, %v189_v7  ;;  %v193_v13 = vld [vmem:[#allocation7 + $0x28] sm:$0xff]  ;;  %v195_v14 = vld [vmem:[#allocation7 + $0x38] sm:$0xff] }
  0x4e   :  { %668 = vmatpush3.bf16.msra.mxu0 %v665_v3  ;;  %v675_v12 = vpack.c.bf16 %v190_v10, %v188_v9  ;;  %v192_v15 = vld [vmem:[#allocation7 + $0x20] sm:$0xff]  ;;  %v677_v16 = vpack.c.bf16 %v195_v14, %v193_v13  ;;  %v194_v17 = vld [vmem:[#allocation7 + $0x30] sm:$0xff]  ;;  %v197_v18 = vld [vmem:[#allocation7 + $0x48] sm:$0xff] }
  0x4f   :  { %670 = vmatprep.subr.bf16.mxu0 %v669_v6  ;;  %v199_v19 = vld [vmem:[#allocation7 + $0x58] sm:$0xff]  ;;  %674 = vmatprep.subr.bf16.mxu1 %v673_v11  ;;  %v679_v20 = vpack.c.bf16 %v194_v17, %v192_v15  ;;  %v964_v21 = vld [vmem:[#allocation5 + $0x8] sm:$0xff]  ;;  %v196_v23 = vld [vmem:[#allocation7 + $0x40] sm:$0xff] }
  0x50   :  { %676 = vmatpush1.bf16.msra.mxu1 %v675_v12  ;;  %v681_v22 = vpack.c.bf16 %v199_v19, %v197_v18  ;;  %v198_v24 = vld [vmem:[#allocation7 + $0x50] sm:$0xff]  ;;  %v201_v26 = vld [vmem:[#allocation7 + $0x68] sm:$0xff]  ;;  %v203_v27 = vld [vmem:[#allocation7 + $0x78] sm:$0xff] }
  0x51   :  { %678 = vmatprep.subr.bf16.mxu1 %v677_v16  ;;  %v966_v25 = vld [vmem:[#allocation5 + $0x10] sm:$0xff]  ;;  %v683_v28 = vpack.c.bf16 %v198_v24, %v196_v23  ;;  %v972_v29 = vld [vmem:[#allocation5 + $0x18] sm:$0xff]  ;;  %v685_v30 = vpack.c.bf16 %v203_v27, %v201_v26  ;;  %v200_v31 = vld [vmem:[#allocation7 + $0x60] sm:$0xff] }
  0x52   :  { %672 = vmatpush3.bf16.msra.mxu0 %v669_v6  ;;  %v202_v32 = vld [vmem:[#allocation7 + $0x70] sm:$0xff]  ;;  %v421_v39 = vld [vmem:[#allocation8] sm:$0xff]  ;;  %v422_v40 = vld [vmem:[#allocation8 + $0x8] sm:$0xff] }
  0x53   :  { %v687_v33 = vpack.c.bf16 %v202_v32, %v200_v31  ;;  %v423_v41 = vld [vmem:[#allocation8 + $0x10] sm:$0xff]  ;;  %v697_v42 = vpack.c.bf16 %v422_v40, %v421_v39  ;;  %v424_v43 = vld [vmem:[#allocation8 + $0x18] sm:$0xff]  ;;  %v425_v45 = vld [vmem:[#allocation8 + $0x20] sm:$0xff] }
  0x54   :  { %680 = vmatpush1.bf16.msra.mxu1 %v679_v20  ;;  %v701_v44 = vpack.c.bf16 %v424_v43, %v423_v41  ;;  %v426_v46 = vld [vmem:[#allocation8 + $0x28] sm:$0xff]  ;;  %v427_v48 = vld [vmem:[#allocation8 + $0x30] sm:$0xff]  ;;  %v428_v49 = vld [vmem:[#allocation8 + $0x38] sm:$0xff] }
  0x55   :  { %624 = vmatmul.mubr.msk.f32.vlgmr.msra.gmra.mrb[0].mxu0 %vm90_vm0, %v964_v21  ;;  %682 = vmatprep.subr.bf16.mxu1 %v681_v22  ;;  %v705_v47 = vpack.c.bf16 %v426_v46, %v425_v45  ;;  %v709_v50 = vpack.c.bf16 %v428_v49, %v427_v48  ;;  %v577_v53 = vld [vmem:[%s1018_s3] ss:$0 sm:$0xff] }
  0x56   :  { %626 = vmatprep.mubr.msk.f32.mxu0 %vm90_vm0, %v966_v25  ;;  %v576_v10 = vld [vmem:[%s1019_s4] ss:$0 sm:$0xff]  ;;  %s858_s4 = smov [#allocation10]  }
  0x57   :  { %v582_v11 = vld [vmem:[%s1021_s6] ss:$0 sm:$0xff]  ;;  %s554_s6 = sshll.u32 %s858_s4, 4  ;;  %s555_s6 = int_to_ptr.vmem [resolvable:$true] %s554_s6 }
  0x58   :  { %684 = vmatpush1.bf16.msra.mxu1 %v683_v28  ;;  %s819_s10 = scalar_lea.vmem %s555_s6, 512  ;;  %p824_p5 = scmp.lt.s32.totalorder %s555_s6, %s555_s6 }
  0x59   :  { %627 = vmatmul.mubr.msk.f32.gmra.mrb[2].mxu0 %vm90_vm0, %v972_v29  ;;  %686 = vmatprep.subr.bf16.mxu1 %v685_v30  ;;  %p820_p4 = scmp.ne.s32.totalorder %s555_s6, %s819_s10  ;;  %p825_p6 = scmp.lt.s32.totalorder %s819_s10, %s819_s10 }
  0x5a   :  { %637 = vmatprep.mubr.msk.f32.mxu0 %vm90_vm0, %v86_v5 }
  0x5b   :  { %p826_p7 = por %p825_p6, %p824_p5 }
  0x5c   :  { %688 = vmatpush1.bf16.msra.mxu1 %v687_v33 }
  0x5d   :  { %713 = vmatprep.subr.bf16.mxu1 %v697_v42  ;;  %p827_p8 = pnand %p826_p7, %p820_p4 }
 0x128   :  { %v625_v35 = vpop.f32.mrb[0].mxu0 }
 0x129   :  { %v169_v36 = vpop.f32.mrb[1].mxu0 }
 0x12a   :  { %572 = vmatmul.mubr.msk.f32.vlgmr.msra.gmra.mrb[0].mxu1 %vm204_vm1, %v169_v36 }
 0x12b   :  { %287 = vmatprep.mubr.f32.mxu1 %v857_v34  ;;  %717 = vmatpush3.bf16.msra.mxu1 %v697_v42 }
 0x12c   :  { %v628_v37 = vpop.f32.mrb[2].mxu0  ;;  %714 = vmatprep.subr.bf16.mxu1 %v701_v44 }
 0x12d   :  { %v179_v38 = vpop.f32.mrb[3].mxu0 }
 0x12e   :  { %573 = vmatmul.mubr.msk.f32.gmra.mrb[2].mxu1 %vm204_vm1, %v625_v35 }
 0x12f   :  { %293 = vmatprep.mubr.f32.mxu1 %v857_v34  ;;  %718 = vmatpush3.bf16.msra.mxu1 %v701_v44 }
 0x130   :  { %715 = vmatprep.subr.bf16.mxu1 %v705_v47 }
 0x132   :  { %574 = vmatmul.mubr.msk.f32.gmra.mrb[4].mxu1 %vm204_vm1, %v179_v38 }
 0x133   :  { %299 = vmatprep.mubr.f32.mxu1 %v857_v34  ;;  %719 = vmatpush3.bf16.msra.mxu1 %v705_v47 }
 0x134   :  { %716 = vmatprep.subr.bf16.mxu1 %v709_v50 }
 0x136   :  { %575 = vmatmul.mubr.msk.f32.gmra.mrb[6].mxu1 %vm204_vm1, %v628_v37 }
 0x137   :  { %720 = vmatpush3.bf16.msra.mxu1 %v709_v50 }
 0x1fd   :  { %v283_v51 = vpop.f32.mrb[0].mxu1 }
 0x1fe   :  { %v285_v52 = vpop.f32.mrb[1].mxu1  ;;  %v313_v13 = vadd.f32 %v576_v10, %v283_v51 }
 0x1ff   :  { %v328_v54 = vadd.f32 %v577_v53, %v285_v52 }
 0x201   :  { %v289_v55 = vpop.f32.mrb[2].mxu1  ;;  %v332_v58 = vmax.f32 %v328_v54, 0.0 }
 0x202   :  { %v291_v56 = vpop.f32.mrb[3].mxu1  ;;  %v314_v12 = vadd.f32 %v576_v10, %v289_v55 }
 0x203   :  { %v329_v57 = vadd.f32 %v577_v53, %v291_v56 }
 0x204   :  { %v318_v18 = vmax.f32 %v314_v12, 0.0 }
 0x205   :  { %v333_v59 = vmax.f32 %v329_v57, 0.0  ;;  %v295_v60 = vpop.f32.mrb[4].mxu1 }
 0x206   :  { %v297_v61 = vpop.f32.mrb[5].mxu1  ;;  %v315_v22 = vadd.f32 %v576_v10, %v295_v60 }
 0x207   :  { %v689_v62 = vpack.c.bf16 %v333_v59, %v332_v58  ;;  %v330_v63 = vadd.f32 %v577_v53, %v297_v61 }
 0x208   :  { %v319_v33 = vmax.f32 %v315_v22, 0.0 }
 0x209   :  { %v301_v0 = vpop.f32.mrb[6].mxu1  ;;  %690 = vmatprep.subr.bf16.mxu0 %v689_v62  ;;  %v334_v3 = vmax.f32 %v330_v63, 0.0 }
 0x20a   :  { %v303_v1 = vpop.f32.mrb[7].mxu1  ;;  %692 = vmatpush3.bf16.msra.mxu0 %v689_v62  ;;  %v316_v19 = vadd.f32 %v576_v10, %v301_v0 }
 0x20b   :  { %v331_v2 = vadd.f32 %v577_v53, %v303_v1 }
 0x20c   :  { %v320_v30 = vmax.f32 %v316_v19, 0.0 }
 0x20d   :  { %v335_v4 = vmax.f32 %v331_v2, 0.0 }
 0x20f   :  { %v693_v5 = vpack.c.bf16 %v335_v4, %v334_v3 }
 0x211   :  { %694 = vmatprep.subr.bf16.mxu0 %v693_v5 }
 0x212   :  { %696 = vmatpush3.bf16.msra.mxu0 %v693_v5 }
 0x213   :  { %698 = vmatprep.subr.bf16.mxu0 %v697_v42 }
 0x215   :  { %638 = vmatmul.mubr.msk.f32.vlgmr.msra.gmra.mrb[4].mxu0 %vm90_vm0, %v964_v21  ;;  %v317_v21 = vmax.f32 %v313_v13, 0.0 }
 0x216   :  { %640 = vmatprep.mubr.msk.f32.mxu0 %vm90_vm0, %v966_v25  ;;  %700 = vmatpush3.bf16.msra.mxu0 %v697_v42 }
 0x217   :  { %702 = vmatprep.subr.bf16.mxu0 %v701_v44 }
 0x219   :  { %641 = vmatmul.mubr.msk.f32.gmra.mrb[6].mxu0 %vm90_vm0, %v972_v29 }
 0x21a   :  { %704 = vmatpush3.bf16.msra.mxu0 %v701_v44 }
 0x21b   :  { %706 = vmatprep.subr.bf16.mxu0 %v705_v47 }
 0x21e   :  { %708 = vmatpush3.bf16.msra.mxu0 %v705_v47 }
 0x21f   :  { %710 = vmatprep.subr.bf16.mxu0 %v709_v50 }
 0x222   :  { %712 = vmatpush3.bf16.msra.mxu0 %v709_v50 }
 0x2e8   :  { %v639_v6 = vpop.f32.mrb[4].mxu0 }
 0x2e9   :  { %v402_v7 = vpop.f32.mrb[5].mxu0 }
 0x2ea   :  { %659 = vmatprep.mubr.msk.f32.mxu0 %vm204_vm1, %v402_v7 }
 0x2eb   :  { %660 = vmatmul.mubr.msk.f32.vlgmr.msra.gmra.mrb[8].mxu0 %vm204_vm1, %v639_v6 }
 0x2ec   :  { %v642_v8 = vpop.f32.mrb[6].mxu0 }
 0x2ed   :  { %v412_v9 = vpop.f32.mrb[7].mxu0 }
 0x2ee   :  { %662 = vmatprep.mubr.msk.f32.mxu1 %vm204_vm1, %v412_v9 }
 0x2ef   :  { %663 = vmatmul.mubr.msk.f32.vlgmr.msra.gmra.mrb[8].mxu1 %vm204_vm1, %v642_v8 }
 0x3be   :  { %v661_v14 = vpop.f32.mrb[8].mxu0 }
 0x3bf   :  { %v520_v15 = vadd.f32 %v661_v14, %v582_v11  ;;  %v514_v16 = vpop.f32.mrb[9].mxu0 }
 0x3c0   :  { %v515_v17 = vadd.f32 %v582_v11, %v514_v16 }
 0x3c1   :  { %v534_v20 = vmax.f32 %v520_v15, 0.0 }
 0x3c2   :  { %v533_v23 = vmax.f32 %v515_v17, 0.0  ;;  %v664_v24 = vpop.f32.mrb[8].mxu1 }
 0x3c3   :  { %v538_v25 = vadd.f32 %v534_v20, %v318_v18  ;;  %v530_v26 = vadd.f32 %v664_v24, %v582_v11  ;;  %v524_v27 = vpop.f32.mrb[9].mxu1 }
 0x3c4   :  { %v537_v28 = vadd.f32 %v533_v23, %v317_v21  ;;  %v525_v29 = vadd.f32 %v582_v11, %v524_v27 }
 0x3c5   :  { %v542_v31 = vmax.f32 %v538_v25, 0.0  ;;  %v536_v32 = vmax.f32 %v530_v26, 0.0 }
 0x3c6   :  { %v541_v34 = vmax.f32 %v537_v28, 0.0  ;;  %v535_v35 = vmax.f32 %v525_v29, 0.0 }
 0x3c7   :  { %546 = vst [vmem:[#allocation10 + $0x8] sm:$0xff] %v542_v31  ;;  %v540_v36 = vadd.f32 %v536_v32, %v320_v30 }
 0x3c8   :  { %545 = vst [vmem:[#allocation10] sm:$0xff] %v541_v34  ;;  %v539_v37 = vadd.f32 %v535_v35, %v319_v33 }
 0x3c9   :  { %v544_v38 = vmax.f32 %v540_v36, 0.0 }
 0x3ca   :  { %v543_v39 = vmax.f32 %v539_v37, 0.0 }
 0x3cb   :  { %548 = vst [vmem:[#allocation10 + $0x18] sm:$0xff] %v544_v38 }
 0x3cc   :  { %547 = vst [vmem:[#allocation10 + $0x10] sm:$0xff] %v543_v39 }
 0x3cd   :  { %830 = shalt.err (!%p827_p8)
}
 0x3ce   :  { %s831_s15 = scalar_lea.hbm %s1022_s7, 512 }
 0x3cf   :  { %p832_p9 = scmp.ne.s32.totalorder %s1022_s7, %s831_s15  ;;  %p835_p10 = scmp.lt.u32.totalorder %s831_s15, %s1022_s7 }
 0x3d1   :  { %p837_p11 = pnand %p835_p10, %p832_p9 }
 0x3d3   :  { %840 = shalt.err (!%p837_p11)
}
 0x3d4   :  { %560 = dma.vmem_to_hbm [thread:$0]  %s555_s6, 512, %s1022_s7, [#allocation4], %s851_s13, %s851_s13, %s852_s14  }
 0x3d5   :  { %847 = dma.done.wait [#allocation4], 512  }
 0x3d6   :  { %848 = vsyncadd [#allocation4], 4294966784 }
 0x3d7   :  { %564 = vsyncpa [#allocation3], 1 }
 0x3d8   :  { %565 = vsyncpa [#allocation6], 1 }
 0x3d9   :  { %566 = vsyncpa [#allocation9], 1 }
 0x3da   :  { %567 = vsyncpa [#allocation4], 1 }

</bundles_post_ra>
